<compile_context>
chip_gen: v7x
topology: tpu7x:2x2x1
jax: 0.10.0
libtpu: 0.0.40
codegen_flags: <defaults>
</compile_context>

<pallas_src>
import functools

import jax
import jax.numpy as jnp
from jax.experimental import pallas as pl
from jax.experimental.pallas import tpu as pltpu


def mlp_kernel(x_ref, w0_ref, b0_ref, w1_ref, b1_ref, w2_ref, b2_ref, o_ref):
    """Fused 2-hidden-layer MLP in [features, batch] layout.

    x_ref : (in_ch, TILE_B)  bf16   streamed over the batch grid
    wK    : (out_k, in_k)    bf16   VMEM-resident (constant index_map)
    bK    : (out_k, 1)       f32    VMEM-resident
    o_ref : (out,  TILE_B)   bf16   lane-dense output tile (log-probs)
    """
    x = x_ref[...]

    # Layer 0: Linear + ReLU      (h0, in) @ (in, TILE_B) -> (h0, TILE_B)
    h = jnp.dot(w0_ref[...], x, preferred_element_type=jnp.float32) + b0_ref[...]
    h = jnp.maximum(h, 0.0)

    # TODO(synk): F.dropout between hidden layers is skipped (p=0 / eval mode -> identity).

    # Layer 1: Linear + ReLU
    h = jnp.dot(w1_ref[...], h.astype(w1_ref.dtype),
                preferred_element_type=jnp.float32) + b1_ref[...]
    h = jnp.maximum(h, 0.0)

    # Final layer: Linear
    logits = jnp.dot(w2_ref[...], h.astype(w2_ref.dtype),
                     preferred_element_type=jnp.float32) + b2_ref[...]

    # log_softmax along the feature (sublane) axis, numerically stable, in f32.
    # NOTE: padded batch columns of a partial last tile run exp() on garbage.
    # This is harmless: the softmax is strictly per-column and out-of-bounds
    # columns are masked on writeback.  Do NOT "fix" it by reducing across
    # columns.
    m = jnp.max(logits, axis=0, keepdims=True)
    shifted = logits - m
    lse = jnp.log(jnp.sum(jnp.exp(shifted), axis=0, keepdims=True))
    o_ref[...] = (shifted - lse).astype(o_ref.dtype)


@functools.partial(
    jax.jit, static_argnames=("tile_b", "x_buffers", "vmem_limit_bytes"))
def _mlp_pallas_t(xt, w0, b0, w1, b1, w2, b2, *, tile_b, x_buffers,
                  vmem_limit_bytes):
    """Transposed-layout forward: xt is (in_ch, batch) bf16 -> (out, batch) bf16."""
    in_ch, batch = xt.shape
    h0 = w0.shape[0]
    h1 = w1.shape[0]
    out_size = w2.shape[0]

    grid = (pl.cdiv(batch, tile_b),)

    def resident(shape):
        # Same block every grid step -> Pallas keeps it VMEM-resident (no re-DMA).
        return pl.BlockSpec(shape, lambda i: (0, 0))

    if x_buffers > 2:
        # Optional deeper pipelining of the streamed activations (use only if a
        # profile shows exposed DMA at large tiles).
        x_spec = pl.BlockSpec((in_ch, tile_b), lambda i: (0, i),
                              pipeline_mode=pl.Buffered(x_buffers))
    else:
        x_spec = pl.BlockSpec((in_ch, tile_b), lambda i: (0, i))

    return pl.pallas_call(
        mlp_kernel,
        out_shape=jax.ShapeDtypeStruct((out_size, batch), jnp.bfloat16),
        grid=grid,
        in_specs=[
            x_spec,                                  # streamed activations
            resident((h0, in_ch)), resident((h0, 1)),
            resident((h1, h0)),    resident((h1, 1)),
            resident((out_size, h1)), resident((out_size, 1)),
        ],
        out_specs=pl.BlockSpec((out_size, tile_b), lambda i: (0, i)),
        compiler_params=pltpu.CompilerParams(
            # Batch tiles are independent -> shard across TCs on v7x megacore.
            dimension_semantics=("parallel",),
            # Explicit limit so big tiles don't trip v5e's 16 MiB default.
            vmem_limit_bytes=vmem_limit_bytes,
        ),
    )(xt, w0, b0, w1, b1, w2, b2)


def _choose_tile_b(batch, requested):
    """Guard the batch tile: multiple of 128 (or the full batch), and keep the
    grid length >= 2 for large batches so v7x megacore has work to split."""
    requested = max(128, (requested // 128) * 128)
    if batch < 2 * 128:
        return batch                       # single full block (always legal)
    half = (batch // 2) // 128 * 128       # cap at batch/2 -> grid >= 2
    return max(128, min(requested, half))


def pack_params(params):
    """Cast torch-style [(W(out,in), b(out,)), ...] into the kernel layout."""
    args = []
    for w, b in params:
        args.append(jnp.asarray(w, jnp.float32).astype(jnp.bfloat16))   # (out,in) bf16
        args.append(jnp.asarray(b, jnp.float32).reshape(-1, 1))         # (out,1) f32
    return args


def mlp_forward_t(xt, params, *, tile_b=16384, x_buffers=2,
                  vmem_limit_bytes=32 * 1024 * 1024):
    """Layout-native entry point (preferred).

    xt     : (in_channels, batch) bf16  -- batch on the 128-lane axis.
    return : (output_size, batch) bf16  log-probabilities.

    Producers/consumers that hand over / accept this layout avoid two full
    HBM transpose passes relative to the (batch, features) interface.
    """
    in_ch, batch = xt.shape
    tb = _choose_tile_b(batch, tile_b)
    args = pack_params(params)
    return _mlp_pallas_t(xt.astype(jnp.bfloat16), *args, tile_b=tb,
                         x_buffers=x_buffers,
                         vmem_limit_bytes=vmem_limit_bytes)


def mlp_forward(x, params, *, tile_b=16384):
    """PyTorch-layout compatibility wrapper.

    x: (batch, in_ch) f32 -> (batch, output_size) bf16 log-probs.
    The transpose/cast here are pure layout plumbing; use mlp_forward_t when
    the caller can supply/accept the transposed layout.
    """
    xt = x.astype(jnp.bfloat16).T                    # (in_ch, batch), lane = batch
    out_t = mlp_forward_t(xt, params, tile_b=tile_b)  # (out, batch) bf16
    return out_t.T                                    # (batch, out)


def init_linear(key, fan_in, fan_out):
    """Deterministic init mimicking torch.nn.Linear: U(-1/sqrt(fan_in), 1/sqrt(fan_in))."""
    kw, kb = jax.random.split(key)
    bound = 1.0 / jnp.sqrt(jnp.float32(fan_in))
    w = jax.random.uniform(kw, (fan_out, fan_in), jnp.float32, -bound, bound)
    b = jax.random.uniform(kb, (fan_out,), jnp.float32, -bound, bound)
    return w, b


def reference_forward(x, params):
    """Pure-JAX reference mirroring the kernel's mixed-precision numerics (f32 out)."""
    (w0, b0), (w1, b1), (w2, b2) = params
    h = jnp.dot(x.astype(jnp.bfloat16), w0.astype(jnp.bfloat16).T,
                preferred_element_type=jnp.float32) + b0
    h = jnp.maximum(h, 0.0)
    h = jnp.dot(h.astype(jnp.bfloat16), w1.astype(jnp.bfloat16).T,
                preferred_element_type=jnp.float32) + b1
    h = jnp.maximum(h, 0.0)
    logits = jnp.dot(h.astype(jnp.bfloat16), w2.astype(jnp.bfloat16).T,
                     preferred_element_type=jnp.float32) + b2
    return jax.nn.log_softmax(logits, axis=-1)


if __name__ == "__main__":
    in_channels = 16
    hidden = [32, 32]
    output_size = 8
    batch = 8

    key = jax.random.PRNGKey(0)
    kx, k0, k1, k2 = jax.random.split(key, 4)

    x = jax.random.normal(kx, (batch, in_channels), jnp.float32)
    params = [
        init_linear(k0, in_channels, hidden[0]),
        init_linear(k1, hidden[0], hidden[1]),
        init_linear(k2, hidden[1], output_size),
    ]

    out = mlp_forward(x, params)
    out = jax.block_until_ready(out)

    ref = reference_forward(x, params)
    assert out.shape == (batch, output_size)
    assert out.dtype == jnp.bfloat16
    # Output is bf16 log-probs; compare against the f32 reference with a
    # tolerance that covers bf16 rounding of values in roughly [-6, 0].
    assert bool(jnp.allclose(out.astype(jnp.float32), ref,
                             atol=5e-2, rtol=5e-2)), \
        "Pallas output mismatch vs reference"

    print("KERNEL_OK")
</pallas_src>

<mosaic_0001>
module attributes {stable_mosaic.version = 11 : i64} {
  func.func @mlp_kernel(%arg0: i32, %arg1: memref<16x8xbf16, #tpu.memory_space<vmem>>, %arg2: memref<32x16xbf16, #tpu.memory_space<vmem>>, %arg3: memref<32x1xf32, #tpu.memory_space<vmem>>, %arg4: memref<32x32xbf16, #tpu.memory_space<vmem>>, %arg5: memref<32x1xf32, #tpu.memory_space<vmem>>, %arg6: memref<8x32xbf16, #tpu.memory_space<vmem>>, %arg7: memref<8x1xf32, #tpu.memory_space<vmem>>, %arg8: memref<8x8xbf16, #tpu.memory_space<vmem>>) attributes {dimension_semantics = [#tpu.dimension_semantics<parallel>], iteration_bounds = array<i64: 1>, scalar_prefetch = 0 : i64, scratch_operands = 0 : i64, tpu.core_type = #tpu.core_type<tc>, window_params = [{transform_indices = @transform_0, window_bounds = array<i64: 16, 8>}, {pipeline_mode = #tpu.pipeline_mode<synchronous>, transform_indices = @transform_1, window_bounds = array<i64: 32, 16>}, {pipeline_mode = #tpu.pipeline_mode<synchronous>, transform_indices = @transform_2, window_bounds = array<i64: 32, 1>}, {pipeline_mode = #tpu.pipeline_mode<synchronous>, transform_indices = @transform_3, window_bounds = array<i64: 32, 32>}, {pipeline_mode = #tpu.pipeline_mode<synchronous>, transform_indices = @transform_4, window_bounds = array<i64: 32, 1>}, {pipeline_mode = #tpu.pipeline_mode<synchronous>, transform_indices = @transform_5, window_bounds = array<i64: 8, 32>}, {pipeline_mode = #tpu.pipeline_mode<synchronous>, transform_indices = @transform_6, window_bounds = array<i64: 8, 1>}, {transform_indices = @transform_7, window_bounds = array<i64: 8, 8>}]} {
    %c0 = arith.constant 0 : index
    %c0_0 = arith.constant 0 : index
    %0 = vector.load %arg1[%c0, %c0_0] : memref<16x8xbf16, #tpu.memory_space<vmem>>, vector<16x8xbf16>
    %c0_1 = arith.constant 0 : index
    %c0_2 = arith.constant 0 : index
    %1 = vector.load %arg2[%c0_1, %c0_2] : memref<32x16xbf16, #tpu.memory_space<vmem>>, vector<32x16xbf16>
    %cst = arith.constant dense<0.000000e+00> : vector<32x8xf32>
    %2 = tpu.matmul %1, %0, %cst {dimension_numbers = #tpu.dot_dimension_numbers<[1], [0], [0], [1], [0, 0, 1, 1], [], []>} : vector<32x16xbf16>, vector<16x8xbf16>, vector<32x8xf32> -> vector<32x8xf32>
    %c0_3 = arith.constant 0 : index
    %c0_4 = arith.constant 0 : index
    %3 = vector.load %arg3[%c0_3, %c0_4] : memref<32x1xf32, #tpu.memory_space<vmem>>, vector<32x1xf32>
    %4 = vector.broadcast %3 : vector<32x1xf32> to vector<32x8xf32>
    %5 = arith.addf %2, %4 : vector<32x8xf32>
    %cst_5 = arith.constant 0.000000e+00 : f32
    %6 = vector.broadcast %cst_5 : f32 to vector<32x8xf32>
    %7 = arith.maximumf %5, %6 : vector<32x8xf32>
    %c0_6 = arith.constant 0 : index
    %c0_7 = arith.constant 0 : index
    %8 = vector.load %arg4[%c0_6, %c0_7] : memref<32x32xbf16, #tpu.memory_space<vmem>>, vector<32x32xbf16>
    %9 = arith.truncf %7 : vector<32x8xf32> to vector<32x8xbf16>
    %cst_8 = arith.constant dense<0.000000e+00> : vector<32x8xf32>
    %10 = tpu.matmul %8, %9, %cst_8 {dimension_numbers = #tpu.dot_dimension_numbers<[1], [0], [0], [1], [0, 0, 1, 1], [], []>} : vector<32x32xbf16>, vector<32x8xbf16>, vector<32x8xf32> -> vector<32x8xf32>
    %c0_9 = arith.constant 0 : index
    %c0_10 = arith.constant 0 : index
    %11 = vector.load %arg5[%c0_9, %c0_10] : memref<32x1xf32, #tpu.memory_space<vmem>>, vector<32x1xf32>
    %12 = vector.broadcast %11 : vector<32x1xf32> to vector<32x8xf32>
    %13 = arith.addf %10, %12 : vector<32x8xf32>
    %cst_11 = arith.constant 0.000000e+00 : f32
    %14 = vector.broadcast %cst_11 : f32 to vector<32x8xf32>
    %15 = arith.maximumf %13, %14 : vector<32x8xf32>
    %c0_12 = arith.constant 0 : index
    %c0_13 = arith.constant 0 : index
    %16 = vector.load %arg6[%c0_12, %c0_13] : memref<8x32xbf16, #tpu.memory_space<vmem>>, vector<8x32xbf16>
    %17 = arith.truncf %15 : vector<32x8xf32> to vector<32x8xbf16>
    %cst_14 = arith.constant dense<0.000000e+00> : vector<8x8xf32>
    %18 = tpu.matmul %16, %17, %cst_14 {dimension_numbers = #tpu.dot_dimension_numbers<[1], [0], [0], [1], [0, 0, 1, 1], [], []>} : vector<8x32xbf16>, vector<32x8xbf16>, vector<8x8xf32> -> vector<8x8xf32>
    %c0_15 = arith.constant 0 : index
    %c0_16 = arith.constant 0 : index
    %19 = vector.load %arg7[%c0_15, %c0_16] : memref<8x1xf32, #tpu.memory_space<vmem>>, vector<8x1xf32>
    %20 = vector.broadcast %19 : vector<8x1xf32> to vector<8x8xf32>
    %21 = arith.addf %18, %20 : vector<8x8xf32>
    %cst_17 = arith.constant dense<0xFF800000> : vector<8xf32>
    %22 = vector.multi_reduction <maximumf>, %21, %cst_17 [0] : vector<8x8xf32> to vector<8xf32>
    %23 = vector.shape_cast %22 : vector<8xf32> to vector<1x8xf32>
    %24 = vector.broadcast %23 : vector<1x8xf32> to vector<8x8xf32>
    %25 = arith.subf %21, %24 : vector<8x8xf32>
    %26 = math.exp %25 : vector<8x8xf32>
    %cst_18 = arith.constant dense<0.000000e+00> : vector<8xf32>
    %27 = vector.multi_reduction <add>, %26, %cst_18 [0] : vector<8x8xf32> to vector<8xf32>
    %28 = vector.shape_cast %27 : vector<8xf32> to vector<1x8xf32>
    %29 = math.log %28 : vector<1x8xf32>
    %30 = vector.broadcast %29 : vector<1x8xf32> to vector<8x8xf32>
    %31 = arith.subf %25, %30 : vector<8x8xf32>
    %32 = arith.truncf %31 : vector<8x8xf32> to vector<8x8xbf16>
    %c0_19 = arith.constant 0 : index
    %c0_20 = arith.constant 0 : index
    %33 = vector.load %arg8[%c0_19, %c0_20] : memref<8x8xbf16, #tpu.memory_space<vmem>>, vector<8x8xbf16>
    tpu.vector_store %arg8[%c0_19, %c0_20], %32 {strides = array<i32>} : memref<8x8xbf16, #tpu.memory_space<vmem>>, vector<8x8xbf16>,
    return
  }
  func.func @transform_0(%arg0: i32) -> (i32, i32) {
    %c0_i32 = arith.constant 0 : i32
    %c0_i32_0 = arith.constant 0 : i32
    return %c0_i32, %arg0 : i32, i32
  }
  func.func @transform_1(%arg0: i32) -> (i32, i32) {
    %c0_i32 = arith.constant 0 : i32
    %c0_i32_0 = arith.constant 0 : i32
    %c0_i32_1 = arith.constant 0 : i32
    return %c0_i32, %c0_i32_0 : i32, i32
  }
  func.func @transform_2(%arg0: i32) -> (i32, i32) {
    %c0_i32 = arith.constant 0 : i32
    %c0_i32_0 = arith.constant 0 : i32
    %c0_i32_1 = arith.constant 0 : i32
    return %c0_i32, %c0_i32_0 : i32, i32
  }
  func.func @transform_3(%arg0: i32) -> (i32, i32) {
    %c0_i32 = arith.constant 0 : i32
    %c0_i32_0 = arith.constant 0 : i32
    %c0_i32_1 = arith.constant 0 : i32
    return %c0_i32, %c0_i32_0 : i32, i32
  }
  func.func @transform_4(%arg0: i32) -> (i32, i32) {
    %c0_i32 = arith.constant 0 : i32
    %c0_i32_0 = arith.constant 0 : i32
    %c0_i32_1 = arith.constant 0 : i32
    return %c0_i32, %c0_i32_0 : i32, i32
  }
  func.func @transform_5(%arg0: i32) -> (i32, i32) {
    %c0_i32 = arith.constant 0 : i32
    %c0_i32_0 = arith.constant 0 : i32
    %c0_i32_1 = arith.constant 0 : i32
    return %c0_i32, %c0_i32_0 : i32, i32
  }
  func.func @transform_6(%arg0: i32) -> (i32, i32) {
    %c0_i32 = arith.constant 0 : i32
    %c0_i32_0 = arith.constant 0 : i32
    %c0_i32_1 = arith.constant 0 : i32
    return %c0_i32, %c0_i32_0 : i32, i32
  }
  func.func @transform_7(%arg0: i32) -> (i32, i32) {
    %c0_i32 = arith.constant 0 : i32
    %c0_i32_0 = arith.constant 0 : i32
    return %c0_i32, %arg0 : i32, i32
  }
}

</mosaic_0001>

<bundles_post_ra>
// kernel: _mlp_pallas_t.1
= control target key start
LH: loop header
LB: loop body
LE: loop exit
PB: predicated region body
PF: predicated region fallthrough
CT: control target
= control target key end

     0   :  { %vm74_vm0 = vcmask 130048   ;;  %v405_v3 = vmov 0   ;;  %s511_s0 = inlined_call_operand.vmem [shape: bf16[16,8], index: 0, kind: input, shape index: {}]   ;;  %s512_s1 = inlined_call_operand.vmem [shape: bf16[32,16], index: 1, kind: input, shape index: {}]   ;;  %s513_s2 = inlined_call_operand.vmem [shape: f32[32,1], index: 2, kind: input, shape index: {}]   ;;  %s514_s3 = inlined_call_operand.vmem [shape: bf16[32,32], index: 3, kind: input, shape index: {}]   ;;  %s515_s4 = inlined_call_operand.vmem [shape: f32[32,1], index: 4, kind: input, shape index: {}]   ;;  %s516_s5 = inlined_call_operand.vmem [shape: bf16[8,32], index: 5, kind: input, shape index: {}]   ;;  %s517_s6 = inlined_call_operand.vmem [shape: f32[8,1], index: 6, kind: input, shape index: {}]   ;;  %s518_s7 = inlined_call_operand.hbm [shape: bf16[8,8], index: 7, kind: output, shape index: {}]  }
   0x1   :  { %v372_v0 = vld [vmem:[%s511_s0] sm:$0xff]   ;;  %v374_v2 = vld [vmem:[%s512_s1 + $0x8] sm:$0xff]   ;;  %370 = vset.pattern.permute.xlu0 %v405_v3  ;;  %v36_v5 = vld [vmem:[%s513_s2 + $0x10] sm:$0xff]  ;;  %371 = vset.pattern.permute.xlu1 %v405_v3 }
   0x2   :  { %v373_v1 = vld [vmem:[%s512_s1] sm:$0xff]   ;;  %344 = vmatprep.subr.bf16.mxu0 %v372_v0  ;;  %v35_v6 = vld [vmem:[%s513_s2 + $0x8] sm:$0xff]  ;;  %50 = vperm.xlu1 %371, %v36_v5   ;;  %v37_v7 = vld [vmem:[%s513_s2 + $0x18] sm:$0xff] }
   0x3   :  { %345 = vmatpush3.bf16.msra.mxu0 %v372_v0  ;;  %346 = vmatprep.mubr.msk.bf16.mxu0 %vm74_vm0, %v373_v1  ;;  %v34_v4 = vld [vmem:[%s513_s2] sm:$0xff] }
   0x4   :  { %40 = vperm.xlu0 %370, %v34_v4  }
   0x6   :  { %347 = vmatmul.mubr.msk.bf16.vlgmr.msra.gmra.mrb[0].mxu0 %vm74_vm0, %v374_v2 }
   0x7   :  { %12 = vsyncpa [#allocation3], 0  ;;  %v140_v8 = vld [vmem:[%s515_s4] sm:$0xff]  ;;  %55 = vperm.xlu1 %371, %v37_v7   ;;  %v141_v9 = vld [vmem:[%s515_s4 + $0x8] sm:$0xff]  ;;  %vm174_vm1 = vcmask 261120   ;;  %v406_v33 = vmov 0.0  }
   0x8   :  { %45 = vperm.xlu0 %370, %v35_v6   ;;  %v142_v10 = vld [vmem:[%s515_s4 + $0x10] sm:$0xff]  ;;  %v143_v11 = vld [vmem:[%s515_s4 + $0x18] sm:$0xff]  ;;  %v237_v12 = vld [vmem:[%s517_s6] sm:$0xff]  ;;  %358 = vmatprep.subr.bf16.mxu0 %v406_v33  ;;  %vm407_vm2 = vmmov 0   ;;  %vm286_vm3 = vcmask 64512   ;;  %vm308_vm4 = vcmask 60416  }
   0x9   :  { %v375_v13 = vld [vmem:[%s514_s3] sm:$0xff]   ;;  %v376_v32 = vld [vmem:[%s514_s3 + $0x8] sm:$0xff]   ;;  %362 = vmatprep.mubr.msk.bf16.mxu0 %vm407_vm2, %v406_v33 }
   0xa   :  { %354 = vmatprep.mubr.msk.bf16.mxu1 %vm174_vm1, %v375_v13  ;;  %v234_v52 = vld [vmem:[%s516_s5] sm:$0xf]  ;;  %s408_s5 = smov [#allocation2]  }
   0xb   :  { %151 = vperm.xlu1 %371, %v141_v9   ;;  %s316_s25 = sshll.u32 %s408_s5, 4  ;;  %s317_s25 = int_to_ptr.vmem [resolvable:$true] %s316_s25 }
   0xc   :  { %146 = vperm.xlu0 %370, %v140_v8   ;;  %s381_s26 = scalar_lea.vmem %s317_s25, 64  ;;  %p386_p1 = scmp.lt.s32.totalorder %s317_s25, %s317_s25 }
   0xd   :  { %p382_p0 = scmp.ne.s32.totalorder %s317_s25, %s381_s26  ;;  %p387_p2 = scmp.lt.s32.totalorder %s381_s26, %s381_s26 }
   0xf   :  { %161 = vperm.xlu1 %371, %v143_v11   ;;  %p388_p3 = por %p387_p2, %p386_p1 }
  0x10   :  { %156 = vperm.xlu0 %370, %v142_v10  }
  0x11   :  { %p389_p4 = pnand %p388_p3, %p382_p0 }
  0x14   :  { %240 = vperm.xlu0 %370, %v237_v12  }
  0x81   :  { %v51_v14 = vpop.permute.xlu1 %50 }
  0x83   :  { %v41_v15 = vpop.permute.xlu0 %40 }
  0x86   :  { %v56_v19 = vpop.permute.xlu1 %55 }
  0x87   :  { %v46_v22 = vpop.permute.xlu0 %45 }
  0x8a   :  { %v152_v35 = vpop.permute.xlu1 %151 }
  0x8b   :  { %v147_v34 = vpop.permute.xlu0 %146 }
  0x8e   :  { %v162_v40 = vpop.permute.xlu1 %161 }
  0x8f   :  { %v157_v36 = vpop.permute.xlu0 %156 }
  0x93   :  { %v241_v53 = vpop.permute.xlu0 %240 }
  0xd9   :  { %v348_v16 = vpop.f32.mrb[0].mxu0 }
  0xda   :  { %v124_v17 = vadd.f32 %v348_v16, %v51_v14  ;;  %v115_v18 = vpop.f32.mrb[1].mxu0 }
  0xdb   :  { %v116_v20 = vadd.f32 %v115_v18, %v41_v15  ;;  %v349_v21 = vpop.f32.mrb[2].mxu0 }
  0xdc   :  { %v127_v23 = vadd.f32 %v349_v21, %v56_v19  ;;  %v118_v24 = vpop.f32.mrb[3].mxu0  ;;  %v132_v26 = vmax.f32 %v124_v17, 0.0 }
  0xdd   :  { %v119_v25 = vadd.f32 %v118_v24, %v46_v22  ;;  %v130_v28 = vmax.f32 %v116_v20, 0.0 }
  0xde   :  { %v133_v27 = vmax.f32 %v127_v23, 0.0 }
  0xdf   :  { %v131_v29 = vmax.f32 %v119_v25, 0.0 }
  0xe0   :  { %v139_v30 = vpack.c.bf16 %v133_v27, %v132_v26 }
  0xe1   :  { %v138_v31 = vpack.c.bf16 %v131_v29, %v130_v28 }
  0xe3   :  { %350 = vmatprep.subr.bf16.mxu1 %v138_v31 }
  0xe4   :  { %351 = vmatpush3.bf16.msra.mxu1 %v138_v31 }
  0xe5   :  { %352 = vmatprep.subr.bf16.mxu1 %v139_v30 }
  0xe8   :  { %353 = vmatpush3.bf16.msra.mxu1 %v139_v30 }
  0xeb   :  { %355 = vmatmul.mubr.msk.bf16.vlgmr.msra.gmra.mrb[0].mxu1 %vm174_vm1, %v376_v32 }
 0x1be   :  { %v356_v37 = vpop.f32.mrb[0].mxu1 }
 0x1bf   :  { %v224_v38 = vadd.f32 %v356_v37, %v157_v36  ;;  %v215_v39 = vpop.f32.mrb[1].mxu1 }
 0x1c0   :  { %v216_v41 = vadd.f32 %v215_v39, %v147_v34  ;;  %v357_v42 = vpop.f32.mrb[2].mxu1 }
 0x1c1   :  { %v227_v43 = vadd.f32 %v357_v42, %v162_v40  ;;  %v218_v44 = vpop.f32.mrb[3].mxu1  ;;  %v232_v46 = vmax.f32 %v224_v38, 0.0 }
 0x1c2   :  { %v219_v45 = vadd.f32 %v218_v44, %v152_v35  ;;  %v230_v48 = vmax.f32 %v216_v41, 0.0 }
 0x1c3   :  { %v233_v47 = vmax.f32 %v227_v43, 0.0 }
 0x1c4   :  { %v231_v49 = vmax.f32 %v219_v45, 0.0 }
 0x1c5   :  { %v236_v50 = vpack.c.bf16 %v233_v47, %v232_v46 }
 0x1c6   :  { %v235_v51 = vpack.c.bf16 %v231_v49, %v230_v48 }
 0x1c8   :  { %359 = vmatpush3.bf16.msra.mxu0 %v235_v51 }
 0x1c9   :  { %360 = vmatprep.subr.bf16.mxu0 %v406_v33 }
 0x1cc   :  { %361 = vmatpush3.bf16.msra.mxu0 %v236_v50 }
 0x1cf   :  { %363 = vmatmul.mubr.msk.bf16.vlgmr.msra.gmra.mrb[4].mxu0 %vm174_vm1, %v234_v52 }
 0x2a2   :  { %v280_v54 = vpop.f32.mrb[4].mxu0 }
 0x2a3   :  { %v281_v55 = vadd.f32 %v280_v54, %v241_v53  ;;  %v364_v56 = vpop.f32.mrb[5].mxu0 }
 0x2a4   :  { %v283_v57 = vpop.f32.mrb[6].mxu0 }
 0x2a5   :  { %v287_v58 = vsel %vm286_vm3, %v281_v55, -inf  ;;  %v365_v59 = vpop.f32.mrb[7].mxu0 }
 0x2a6   :  { %v288_v60 = vrot.slane %v287_v58, 4 }
 0x2a8   :  { %v289_v61 = vmax.f32 %v287_v58, %v288_v60 }
 0x2aa   :  { %v290_v62 = vrot.slane %v289_v61, 2 }
 0x2ac   :  { %v291_v63 = vmax.f32 %v289_v61, %v290_v62 }
 0x2ae   :  { %v292_v0 = vrot.slane %v291_v63, 1 }
 0x2b0   :  { %v293_v1 = vmax.f32 %v291_v63, %v292_v0 }
 0x2b2   :  { %v294_v2 = vsub.f32 %v281_v55, %v293_v1 }
 0x2b4   :  { %v295_v3 = vmul.f32 1.442695, %v294_v2 }
 0x2b6   :  { %377 = vpow2.f32 %v295_v3 }
 0x2c0   :  { %v378_v4 = vpop.eup %377 }
 0x2c1   :  { %v297_v5 = vsel %vm286_vm3, %v378_v4, 0.0 }
 0x2c2   :  { %v298_v6 = vrot.slane %v297_v5, 4 }
 0x2c4   :  { %v299_v7 = vadd.f32 %v298_v6, %v297_v5 }
 0x2c6   :  { %v300_v8 = vrot.slane %v299_v7, 2 }
 0x2c8   :  { %v301_v9 = vadd.f32 %v300_v8, %v299_v7 }
 0x2ca   :  { %v302_v10 = vrot.slane %v301_v9, 1 }
 0x2cc   :  { %v303_v11 = vadd.f32 %v302_v10, %v301_v9 }
 0x2ce   :  { %379 = vlog2.f32 %v303_v11 }
 0x2d8   :  { %v380_v12 = vpop.eup %379 }
 0x2d9   :  { %v305_v13 = vmul.f32 0.6931472, %v380_v12 }
 0x2db   :  { %v306_v14 = vsub.f32 %v294_v2, %v305_v13 }
 0x2dd   :  { %v307_v15 = vpack.c.bf16 %v306_v14, %v306_v14 }
 0x2df   :  { %309 = vst.msk [vmem:[#allocation2] sm:$0xf] %vm308_vm4, %v307_v15 }
 0x2e0   :  { %392 = shalt.err (!%p389_p4)
}
 0x2e1   :  { %s393_s29 = scalar_lea.hbm %s518_s7, 64 }
 0x2e2   :  { %p394_p5 = scmp.ne.s32.totalorder %s518_s7, %s393_s29  ;;  %p397_p6 = scmp.lt.u32.totalorder %s393_s29, %s518_s7 }
 0x2e4   :  { %p399_p7 = pnand %p397_p6, %p394_p5 }
 0x2e6   :  { %402 = shalt.err (!%p399_p7)
}
 0x2e7   :  { %319 = dma.vmem_to_hbm [thread:$0]  %s317_s25, 64, %s518_s7, [#allocation3]  }
 0x2e8   :  { %403 = dma.done.wait [#allocation3], 64  }
 0x2e9   :  { %404 = vsyncadd [#allocation3], 4294967232 }
 0x2ea   :  { %323 = vsyncpa [#allocation3], 1 }

</bundles_post_ra>
